<compile_context>
chip_gen: v7x
topology: tpu7x:2x2x1
jax: 0.10.0
libtpu: 0.0.40
codegen_flags: <defaults>
</compile_context>

<pallas_src>
import numpy as np

import jax
import jax.numpy as jnp
from jax import lax
from jax.experimental import pallas as pl
from jax.experimental.pallas import tpu as pltpu


# -----------------------------------------------------------------------------
# Kernel 1: per-image decode (xywh->xyxy, obj*cls confidence, best class)
# -----------------------------------------------------------------------------
def _make_decode_kernel(conf_thres):
    conf_thres = float(conf_thres)

    def kernel(x_ref, out_ref):
        xt = x_ref[0]                      # (F, B): feature rows, boxes on lanes
        cx = xt[0:1, :]
        cy = xt[1:2, :]
        w = xt[2:3, :]
        h = xt[3:4, :]
        obj = xt[4:5, :]
        cls = xt[5:, :]                    # (nc, B)

        cls_conf = cls * obj               # conf = obj_conf * cls_conf
        best_conf = jnp.max(cls_conf, axis=0, keepdims=True)          # (1, B)
        nc = cls.shape[0]
        ridx = lax.broadcasted_iota(jnp.int32, cls_conf.shape, 0).astype(jnp.float32)
        # first (lowest-index) arg-max, as float (matches torch .max(1) index)
        best_cls = jnp.min(
            jnp.where(cls_conf >= best_conf, ridx, jnp.float32(nc)),
            axis=0, keepdims=True)                                     # (1, B)

        hw = 0.5 * w
        hh = 0.5 * h
        x1 = cx - hw
        y1 = cy - hh
        x2 = cx + hw
        y2 = cy + hh

        valid = (obj > conf_thres) & (best_conf > conf_thres)
        score = jnp.where(valid, best_conf, 0.0)

        out_ref[0, 0:1, :] = x1
        out_ref[0, 1:2, :] = y1
        out_ref[0, 2:3, :] = x2
        out_ref[0, 3:4, :] = y2
        out_ref[0, 4:5, :] = score
        out_ref[0, 5:6, :] = best_cls

    return kernel


def _decode_call(pred_t, conf_thres):
    N, F, B = pred_t.shape
    return pl.pallas_call(
        _make_decode_kernel(conf_thres),
        out_shape=jax.ShapeDtypeStruct((N, 6, B), jnp.float32),
        grid_spec=pltpu.PrefetchScalarGridSpec(
            num_scalar_prefetch=0,
            grid=(N,),
            in_specs=[pl.BlockSpec((1, F, B), lambda i: (i, 0, 0))],
            out_specs=pl.BlockSpec((1, 6, B), lambda i: (i, 0, 0)),
        ),
        compiler_params=pltpu.CompilerParams(dimension_semantics=("parallel",)),
    )(pred_t)


# -----------------------------------------------------------------------------
# Kernel 2: exact greedy NMS on score-sorted, class-offset boxes
# -----------------------------------------------------------------------------
def _make_nms_kernel(num_boxes, iou_thres):
    iou_thres = float(iou_thres)

    def kernel(nvalid_ref, d_ref, keep_ref):
        b = pl.program_id(0)
        n = nvalid_ref[b]                  # per-image candidate count (SMEM scalar)

        d = d_ref[0]                       # (5, B): offset x1,y1,x2,y2, score
        x1r = d[0:1, :]
        y1r = d[1:2, :]
        x2r = d[2:3, :]
        y2r = d[3:4, :]
        score = d[4:5, :]
        coords = d[0:4, :]                 # (4, B)
        area_r = (x2r - x1r) * (y2r - y1r)                              # (1, B)
        lane = lax.broadcasted_iota(jnp.int32, (1, num_boxes), 1)
        keep0 = (score > 0.0).astype(jnp.float32)                       # (1, B)

        def body(i, keep):
            sel = lane == i                                             # (1, B)
            # coordinates of box i and its current keep flag, via masked
            # lane reductions (no dynamic lane indexing needed)
            ci = jnp.sum(jnp.where(sel, coords, 0.0), axis=1, keepdims=True)   # (4, 1)
            keep_i = jnp.sum(jnp.where(sel, keep, 0.0), axis=1, keepdims=True)  # (1, 1)
            x1i = ci[0:1, :]
            y1i = ci[1:2, :]
            x2i = ci[2:3, :]
            y2i = ci[3:4, :]

            xx1 = jnp.maximum(x1r, x1i)
            yy1 = jnp.maximum(y1r, y1i)
            xx2 = jnp.minimum(x2r, x2i)
            yy2 = jnp.minimum(y2r, y2i)
            iw = jnp.maximum(xx2 - xx1, 0.0)
            ih = jnp.maximum(yy2 - yy1, 0.0)
            inter = iw * ih
            area_i = (x2i - x1i) * (y2i - y1i)
            union = area_r + area_i - inter
            iou = inter / (union + 1e-9)

            supp = ((iou > iou_thres) & (lane > i)).astype(jnp.float32)
            # box i only suppresses later boxes if it is itself kept -> exact greedy
            return keep * (1.0 - keep_i * supp)

        keep = lax.fori_loop(0, n, body, keep0)
        keep_ref[0] = keep

    return kernel


def _nms_call(nms_in, n_valid, iou_thres):
    N, _, B = nms_in.shape
    return pl.pallas_call(
        _make_nms_kernel(B, iou_thres),
        out_shape=jax.ShapeDtypeStruct((N, 1, B), jnp.float32),
        grid_spec=pltpu.PrefetchScalarGridSpec(
            num_scalar_prefetch=1,
            grid=(N,),
            in_specs=[pl.BlockSpec((1, 5, B), lambda i, nv: (i, 0, 0))],
            out_specs=pl.BlockSpec((1, 1, B), lambda i, nv: (i, 0, 0)),
        ),
        compiler_params=pltpu.CompilerParams(dimension_semantics=("parallel",)),
    )(n_valid, nms_in)


# -----------------------------------------------------------------------------
# Forward: non_max_suppression(prediction, conf, iou, classes=None, max_det)
# -----------------------------------------------------------------------------
def non_max_suppression(pred, conf_thres=0.25, iou_thres=0.45, classes=None,
                        max_det=1000, max_wh=4096.0):
    assert classes is None, "class filtering not implemented (module default is None)"
    # TODO(synk): multi_label / agnostic variants not implemented (module uses defaults).
    pred = pred.astype(jnp.float32)
    N, B0, F = pred.shape
    assert F > 5, "prediction must be (N, boxes, 5 + num_classes)"

    # Pad box axis to a multiple of 128 so the kernels are lane-dense.
    B = ((B0 + 127) // 128) * 128
    if B != B0:
        pred = jnp.pad(pred, ((0, 0), (0, B - B0), (0, 0)))  # obj=0 -> never a candidate

    # (N, boxes, feat) -> (N, feat, boxes): boxes on the 128-lane axis.
    pred_t = jnp.transpose(pred, (0, 2, 1))
    dec = _decode_call(pred_t, conf_thres)                   # (N, 6, B)

    # TODO(synk): descending-score sort has no clean Pallas equivalent; done with jnp.
    score = dec[:, 4, :]
    order = jnp.argsort(-score, axis=-1)
    dec_s = jnp.take_along_axis(dec, order[:, None, :], axis=2)
    boxes_s = dec_s[:, 0:4, :]                               # (N, 4, B) raw xyxy
    score_s = dec_s[:, 4, :]                                 # (N, B)
    cls_s = dec_s[:, 5, :]                                   # (N, B)

    # Class-offset boxes => per-class (batched) NMS, as in the reference.
    off = (cls_s * jnp.float32(max_wh))[:, None, :]
    nms_in = jnp.concatenate([boxes_s + off, score_s[:, None, :]], axis=1)  # (N, 5, B)

    n_valid = jnp.sum((score_s > 0.0).astype(jnp.int32), axis=-1)           # (N,)
    keep = _nms_call(nms_in, n_valid, iou_thres)[:, 0, :]                   # (N, B) {0,1}

    # Cap at max_det and compact into a fixed-size padded output.
    rank = jnp.cumsum(keep, axis=-1)
    keep = keep * (rank <= max_det).astype(jnp.float32)
    num_det = jnp.sum(keep, axis=-1).astype(jnp.int32)

    dets = jnp.concatenate(
        [boxes_s, score_s[:, None, :], cls_s[:, None, :]], axis=1)          # (N, 6, B)
    dets = jnp.transpose(dets, (0, 2, 1))                                   # (N, B, 6)
    slot = jnp.where(keep > 0, rank - 1.0, jnp.float32(max_det)).astype(jnp.int32)
    bidx = jnp.broadcast_to(jnp.arange(N)[:, None], (N, B))
    out = jnp.zeros((N, max_det + 1, 6), jnp.float32)
    out = out.at[bidx, slot].set(dets)
    # TODO(synk): the PyTorch reference returns a python list of variable-length
    # (n_i, 6) tensors; dynamic shapes are not expressible in JAX/Pallas, so we
    # return a padded (N, max_det, 6) tensor plus per-image detection counts.
    return out[:, :max_det, :], num_det


class NMS:
    conf = 0.25
    iou = 0.45
    classes = None
    max_det = 1000

    def __call__(self, x):
        # reference: non_max_suppression(x[0], conf, iou_thres=iou, classes, max_det)
        return non_max_suppression(x[0], self.conf, self.iou, self.classes, self.max_det)


# -----------------------------------------------------------------------------
# Pure numpy reference (same semantics: single-label, class-offset greedy NMS)
# -----------------------------------------------------------------------------
def _reference_nms(pred, conf_thres, iou_thres, max_det, max_wh):
    pred = np.asarray(pred, dtype=np.float32)
    N, B, F = pred.shape
    out = np.zeros((N, max_det, 6), dtype=np.float32)
    counts = np.zeros((N,), dtype=np.int32)
    max_wh = np.float32(max_wh)
    for n in range(N):
        x = pred[n]
        obj = x[:, 4]
        cls_conf = x[:, 5:] * obj[:, None]
        best_conf = cls_conf.max(axis=1)
        best_cls = cls_conf.argmax(axis=1).astype(np.float32)
        valid = (obj > conf_thres) & (best_conf > conf_thres)
        cx, cy, w, h = x[:, 0], x[:, 1], x[:, 2], x[:, 3]
        boxes = np.stack(
            [cx - 0.5 * w, cy - 0.5 * h, cx + 0.5 * w, cy + 0.5 * h], axis=1)
        idx = np.nonzero(valid)[0]
        if idx.size == 0:
            continue
        b, s, c = boxes[idx], best_conf[idx], best_cls[idx]
        order = np.argsort(-s, kind="stable")
        b, s, c = b[order], s[order], c[order]
        ob = b + (c * max_wh)[:, None]
        areas = (ob[:, 2] - ob[:, 0]) * (ob[:, 3] - ob[:, 1])
        m = len(s)
        suppressed = np.zeros(m, dtype=bool)
        kept = []
        for i in range(m):
            if suppressed[i]:
                continue
            kept.append(i)
            xx1 = np.maximum(ob[i, 0], ob[i + 1:, 0])
            yy1 = np.maximum(ob[i, 1], ob[i + 1:, 1])
            xx2 = np.minimum(ob[i, 2], ob[i + 1:, 2])
            yy2 = np.minimum(ob[i, 3], ob[i + 1:, 3])
            iw = np.maximum(xx2 - xx1, 0.0)
            ih = np.maximum(yy2 - yy1, 0.0)
            inter = iw * ih
            union = areas[i] + areas[i + 1:] - inter
            iou = inter / (union + 1e-9)
            suppressed[i + 1:] |= iou > iou_thres
        kept = kept[:max_det]
        k = len(kept)
        out[n, :k, 0:4] = b[kept]
        out[n, :k, 4] = s[kept]
        out[n, :k, 5] = c[kept]
        counts[n] = k
    return out, counts


if __name__ == "__main__":
    key = jax.random.PRNGKey(0)
    kxy, kwh, kobj, kcls = jax.random.split(key, 4)
    Nimg, Nbox, ncls = 2, 256, 11          # prediction: (N, boxes, 5 + nc) = (2, 256, 16)
    cxy = jax.random.uniform(kxy, (Nimg, Nbox, 2), minval=0.0, maxval=200.0)
    wh = jax.random.uniform(kwh, (Nimg, Nbox, 2), minval=20.0, maxval=120.0)
    obj = jax.random.uniform(kobj, (Nimg, Nbox, 1))
    cls = jax.random.uniform(kcls, (Nimg, Nbox, ncls))
    pred = jnp.concatenate([cxy, wh, obj, cls], axis=-1).astype(jnp.float32)

    model = NMS()
    fwd = jax.jit(lambda p: model((p,)))
    dets, counts = fwd(pred)
    dets = jax.block_until_ready(dets)
    counts = jax.block_until_ready(counts)

    ref_dets, ref_counts = _reference_nms(
        np.asarray(pred), NMS.conf, NMS.iou, NMS.max_det, 4096.0)

    assert dets.shape == (Nimg, NMS.max_det, 6)
    assert np.array_equal(np.asarray(counts), ref_counts), (counts, ref_counts)
    assert np.allclose(np.asarray(dets), ref_dets, atol=1e-3, rtol=1e-4), "detection mismatch"

    print("KERNEL_OK")
</pallas_src>

<mosaic_0001>
module attributes {stable_mosaic.version = 11 : i64} {
  func.func @kernel(%arg0: i32, %arg1: memref<1x16x256xf32, #tpu.memory_space<vmem>>, %arg2: memref<1x6x256xf32, #tpu.memory_space<vmem>>) attributes {dimension_semantics = [#tpu.dimension_semantics<parallel>], iteration_bounds = array<i64: 2>, scalar_prefetch = 0 : i64, scratch_operands = 0 : i64, tpu.core_type = #tpu.core_type<tc>, window_params = [{transform_indices = @transform_0, window_bounds = array<i64: 1, 16, 256>}, {transform_indices = @transform_1, window_bounds = array<i64: 1, 6, 256>}]} {
    %c0 = arith.constant 0 : index
    %c0_0 = arith.constant 0 : index
    %c0_1 = arith.constant 0 : index
    %0 = vector.load %arg1[%c0, %c0_0, %c0_1] : memref<1x16x256xf32, #tpu.memory_space<vmem>>, vector<1x16x256xf32>
    %1 = vector.shape_cast %0 : vector<1x16x256xf32> to vector<16x256xf32>
    %2 = vector.extract_strided_slice %1 {offsets = [0, 0], sizes = [1, 256], strides = [1, 1]} : vector<16x256xf32> to vector<1x256xf32>
    %3 = vector.extract_strided_slice %1 {offsets = [1, 0], sizes = [1, 256], strides = [1, 1]} : vector<16x256xf32> to vector<1x256xf32>
    %4 = vector.extract_strided_slice %1 {offsets = [2, 0], sizes = [1, 256], strides = [1, 1]} : vector<16x256xf32> to vector<1x256xf32>
    %5 = vector.extract_strided_slice %1 {offsets = [3, 0], sizes = [1, 256], strides = [1, 1]} : vector<16x256xf32> to vector<1x256xf32>
    %6 = vector.extract_strided_slice %1 {offsets = [4, 0], sizes = [1, 256], strides = [1, 1]} : vector<16x256xf32> to vector<1x256xf32>
    %7 = vector.extract_strided_slice %1 {offsets = [5, 0], sizes = [11, 256], strides = [1, 1]} : vector<16x256xf32> to vector<11x256xf32>
    %8 = vector.broadcast %6 : vector<1x256xf32> to vector<11x256xf32>
    %9 = arith.mulf %7, %8 : vector<11x256xf32>
    %cst = arith.constant dense<0xFF800000> : vector<256xf32>
    %10 = vector.multi_reduction <maximumf>, %9, %cst [0] : vector<11x256xf32> to vector<256xf32>
    %11 = vector.shape_cast %10 : vector<256xf32> to vector<1x256xf32>
    %12 = tpu.iota {dimensions = array<i32: 0>} : vector<11x256xi32>
    %13 = arith.sitofp %12 : vector<11x256xi32> to vector<11x256xf32>
    %14 = vector.broadcast %11 : vector<1x256xf32> to vector<11x256xf32>
    %15 = arith.cmpf oge, %9, %14 : vector<11x256xf32>
    %cst_2 = arith.constant 1.100000e+01 : f32
    %16 = vector.broadcast %cst_2 : f32 to vector<11x256xf32>
    %17 = arith.select %15, %13, %16 : vector<11x256xi1>, vector<11x256xf32>
    %cst_3 = arith.constant dense<0x7F800000> : vector<256xf32>
    %18 = vector.multi_reduction <minimumf>, %17, %cst_3 [0] : vector<11x256xf32> to vector<256xf32>
    %19 = vector.shape_cast %18 : vector<256xf32> to vector<1x256xf32>
    %cst_4 = arith.constant 5.000000e-01 : f32
    %20 = vector.broadcast %cst_4 : f32 to vector<1x256xf32>
    %21 = arith.mulf %20, %4 : vector<1x256xf32>
    %cst_5 = arith.constant 5.000000e-01 : f32
    %22 = vector.broadcast %cst_5 : f32 to vector<1x256xf32>
    %23 = arith.mulf %22, %5 : vector<1x256xf32>
    %24 = arith.subf %2, %21 : vector<1x256xf32>
    %25 = arith.subf %3, %23 : vector<1x256xf32>
    %26 = arith.addf %2, %21 : vector<1x256xf32>
    %27 = arith.addf %3, %23 : vector<1x256xf32>
    %cst_6 = arith.constant 2.500000e-01 : f32
    %28 = vector.broadcast %cst_6 : f32 to vector<1x256xf32>
    %29 = arith.cmpf ogt, %6, %28 : vector<1x256xf32>
    %cst_7 = arith.constant 2.500000e-01 : f32
    %30 = vector.broadcast %cst_7 : f32 to vector<1x256xf32>
    %31 = arith.cmpf ogt, %11, %30 : vector<1x256xf32>
    %32 = arith.andi %29, %31 : vector<1x256xi1>
    %cst_8 = arith.constant 0.000000e+00 : f32
    %33 = vector.broadcast %cst_8 : f32 to vector<1x256xf32>
    %34 = arith.select %32, %11, %33 : vector<1x256xi1>, vector<1x256xf32>
    %c0_9 = arith.constant 0 : index
    %c0_10 = arith.constant 0 : index
    %c0_11 = arith.constant 0 : index
    %35 = vector.load %arg2[%c0_9, %c0_10, %c0_11] : memref<1x6x256xf32, #tpu.memory_space<vmem>>, vector<1x1x256xf32>
    %36 = vector.shape_cast %35 : vector<1x1x256xf32> to vector<1x256xf32>
    %37 = vector.shape_cast %24 : vector<1x256xf32> to vector<1x1x256xf32>
    tpu.vector_store %arg2[%c0_9, %c0_10, %c0_11], %37 {strides = array<i32>} : memref<1x6x256xf32, #tpu.memory_space<vmem>>, vector<1x1x256xf32>,
    %c0_12 = arith.constant 0 : index
    %c1 = arith.constant 1 : index
    %c0_13 = arith.constant 0 : index
    %38 = vector.load %arg2[%c0_12, %c1, %c0_13] : memref<1x6x256xf32, #tpu.memory_space<vmem>>, vector<1x1x256xf32>
    %39 = vector.shape_cast %38 : vector<1x1x256xf32> to vector<1x256xf32>
    %40 = vector.shape_cast %25 : vector<1x256xf32> to vector<1x1x256xf32>
    tpu.vector_store %arg2[%c0_12, %c1, %c0_13], %40 {strides = array<i32>} : memref<1x6x256xf32, #tpu.memory_space<vmem>>, vector<1x1x256xf32>,
    %c0_14 = arith.constant 0 : index
    %c2 = arith.constant 2 : index
    %c0_15 = arith.constant 0 : index
    %41 = vector.load %arg2[%c0_14, %c2, %c0_15] : memref<1x6x256xf32, #tpu.memory_space<vmem>>, vector<1x1x256xf32>
    %42 = vector.shape_cast %41 : vector<1x1x256xf32> to vector<1x256xf32>
    %43 = vector.shape_cast %26 : vector<1x256xf32> to vector<1x1x256xf32>
    tpu.vector_store %arg2[%c0_14, %c2, %c0_15], %43 {strides = array<i32>} : memref<1x6x256xf32, #tpu.memory_space<vmem>>, vector<1x1x256xf32>,
    %c0_16 = arith.constant 0 : index
    %c3 = arith.constant 3 : index
    %c0_17 = arith.constant 0 : index
    %44 = vector.load %arg2[%c0_16, %c3, %c0_17] : memref<1x6x256xf32, #tpu.memory_space<vmem>>, vector<1x1x256xf32>
    %45 = vector.shape_cast %44 : vector<1x1x256xf32> to vector<1x256xf32>
    %46 = vector.shape_cast %27 : vector<1x256xf32> to vector<1x1x256xf32>
    tpu.vector_store %arg2[%c0_16, %c3, %c0_17], %46 {strides = array<i32>} : memref<1x6x256xf32, #tpu.memory_space<vmem>>, vector<1x1x256xf32>,
    %c0_18 = arith.constant 0 : index
    %c4 = arith.constant 4 : index
    %c0_19 = arith.constant 0 : index
    %47 = vector.load %arg2[%c0_18, %c4, %c0_19] : memref<1x6x256xf32, #tpu.memory_space<vmem>>, vector<1x1x256xf32>
    %48 = vector.shape_cast %47 : vector<1x1x256xf32> to vector<1x256xf32>
    %49 = vector.shape_cast %34 : vector<1x256xf32> to vector<1x1x256xf32>
    tpu.vector_store %arg2[%c0_18, %c4, %c0_19], %49 {strides = array<i32>} : memref<1x6x256xf32, #tpu.memory_space<vmem>>, vector<1x1x256xf32>,
    %c0_20 = arith.constant 0 : index
    %c5 = arith.constant 5 : index
    %c0_21 = arith.constant 0 : index
    %50 = vector.load %arg2[%c0_20, %c5, %c0_21] : memref<1x6x256xf32, #tpu.memory_space<vmem>>, vector<1x1x256xf32>
    %51 = vector.shape_cast %50 : vector<1x1x256xf32> to vector<1x256xf32>
    %52 = vector.shape_cast %19 : vector<1x256xf32> to vector<1x1x256xf32>
    tpu.vector_store %arg2[%c0_20, %c5, %c0_21], %52 {strides = array<i32>} : memref<1x6x256xf32, #tpu.memory_space<vmem>>, vector<1x1x256xf32>,
    return
  }
  func.func @transform_0(%arg0: i32) -> (i32, i32, i32) {
    %c0_i32 = arith.constant 0 : i32
    %c0_i32_0 = arith.constant 0 : i32
    %c0_i32_1 = arith.constant 0 : i32
    return %arg0, %c0_i32, %c0_i32_0 : i32, i32, i32
  }
  func.func @transform_1(%arg0: i32) -> (i32, i32, i32) {
    %c0_i32 = arith.constant 0 : i32
    %c0_i32_0 = arith.constant 0 : i32
    %c0_i32_1 = arith.constant 0 : i32
    return %arg0, %c0_i32, %c0_i32_0 : i32, i32, i32
  }
}

module attributes {stable_mosaic.version = 11 : i64} {
  func.func @kernel(%arg0: i32, %arg1: memref<2xi32, #tpu.memory_space<smem>>, %arg2: memref<1x5x256xf32, #tpu.memory_space<vmem>>, %arg3: memref<1x1x256xf32, #tpu.memory_space<vmem>>) attributes {dimension_semantics = [#tpu.dimension_semantics<parallel>], iteration_bounds = array<i64: 2>, scalar_prefetch = 1 : i64, scratch_operands = 0 : i64, tpu.core_type = #tpu.core_type<tc>, window_params = [{transform_indices = @transform_0, window_bounds = array<i64: 1, 5, 256>}, {transform_indices = @transform_1, window_bounds = array<i64: 1, 1, 256>}]} {
    %0 = arith.index_cast %arg0 : i32 to index
    %1 = memref.load %arg1[%0] : memref<2xi32, #tpu.memory_space<smem>>
    %c0 = arith.constant 0 : index
    %c0_0 = arith.constant 0 : index
    %c0_1 = arith.constant 0 : index
    %2 = vector.load %arg2[%c0, %c0_0, %c0_1] : memref<1x5x256xf32, #tpu.memory_space<vmem>>, vector<1x5x256xf32>
    %3 = vector.shape_cast %2 : vector<1x5x256xf32> to vector<5x256xf32>
    %4 = vector.extract_strided_slice %3 {offsets = [0, 0], sizes = [1, 256], strides = [1, 1]} : vector<5x256xf32> to vector<1x256xf32>
    %5 = vector.extract_strided_slice %3 {offsets = [1, 0], sizes = [1, 256], strides = [1, 1]} : vector<5x256xf32> to vector<1x256xf32>
    %6 = vector.extract_strided_slice %3 {offsets = [2, 0], sizes = [1, 256], strides = [1, 1]} : vector<5x256xf32> to vector<1x256xf32>
    %7 = vector.extract_strided_slice %3 {offsets = [3, 0], sizes = [1, 256], strides = [1, 1]} : vector<5x256xf32> to vector<1x256xf32>
    %8 = vector.extract_strided_slice %3 {offsets = [4, 0], sizes = [1, 256], strides = [1, 1]} : vector<5x256xf32> to vector<1x256xf32>
    %9 = vector.extract_strided_slice %3 {offsets = [0, 0], sizes = [4, 256], strides = [1, 1]} : vector<5x256xf32> to vector<4x256xf32>
    %10 = arith.subf %6, %4 : vector<1x256xf32>
    %11 = arith.subf %7, %5 : vector<1x256xf32>
    %12 = arith.mulf %10, %11 : vector<1x256xf32>
    %13 = tpu.iota {dimensions = array<i32: 1>} : vector<1x256xi32>
    %cst = arith.constant 0.000000e+00 : f32
    %14 = vector.broadcast %cst : f32 to vector<1x256xf32>
    %15 = arith.cmpf ogt, %8, %14 : vector<1x256xf32>
    %16 = arith.extui %15 : vector<1x256xi1> to vector<1x256xi32>
    %17 = arith.sitofp %16 : vector<1x256xi32> to vector<1x256xf32>
    %c0_i32 = arith.constant 0 : i32
    %18 = arith.subi %1, %c0_i32 : i32
    %19 = arith.addi %c0_i32, %18 : i32
    %c1_i32 = arith.constant 1 : i32
    %20 = scf.for %arg4 = %c0_i32 to %19 step %c1_i32 iter_args(%arg5 = %17) -> (vector<1x256xf32>)  : i32 {
      %24 = vector.broadcast %arg4 : i32 to vector<1x256xi32>
      %25 = arith.cmpi eq, %13, %24 : vector<1x256xi32>
      %cst_5 = arith.constant 0.000000e+00 : f32
      %26 = vector.shape_cast %25 : vector<1x256xi1> to vector<1x256xi1>
      %27 = vector.broadcast %26 : vector<1x256xi1> to vector<4x256xi1>
      %28 = vector.broadcast %cst_5 : f32 to vector<4x256xf32>
      %29 = arith.select %27, %9, %28 : vector<4x256xi1>, vector<4x256xf32>
      %cst_6 = arith.constant dense<0.000000e+00> : vector<4xf32>
      %30 = vector.multi_reduction <add>, %29, %cst_6 [1] : vector<4x256xf32> to vector<4xf32>
      %31 = vector.shape_cast %30 : vector<4xf32> to vector<4x1xf32>
      %cst_7 = arith.constant 0.000000e+00 : f32
      %32 = vector.broadcast %cst_7 : f32 to vector<1x256xf32>
      %33 = arith.select %25, %arg5, %32 : vector<1x256xi1>, vector<1x256xf32>
      %cst_8 = arith.constant dense<0.000000e+00> : vector<1xf32>
      %34 = vector.multi_reduction <add>, %33, %cst_8 [1] : vector<1x256xf32> to vector<1xf32>
      %35 = vector.shape_cast %34 : vector<1xf32> to vector<1x1xf32>
      %36 = vector.extract_strided_slice %31 {offsets = [0, 0], sizes = [1, 1], strides = [1, 1]} : vector<4x1xf32> to vector<1x1xf32>
      %37 = vector.extract_strided_slice %31 {offsets = [1, 0], sizes = [1, 1], strides = [1, 1]} : vector<4x1xf32> to vector<1x1xf32>
      %38 = vector.extract_strided_slice %31 {offsets = [2, 0], sizes = [1, 1], strides = [1, 1]} : vector<4x1xf32> to vector<1x1xf32>
      %39 = vector.extract_strided_slice %31 {offsets = [3, 0], sizes = [1, 1], strides = [1, 1]} : vector<4x1xf32> to vector<1x1xf32>
      %40 = vector.broadcast %36 : vector<1x1xf32> to vector<1x256xf32>
      %41 = arith.maximumf %4, %40 : vector<1x256xf32>
      %42 = vector.broadcast %37 : vector<1x1xf32> to vector<1x256xf32>
      %43 = arith.maximumf %5, %42 : vector<1x256xf32>
      %44 = vector.broadcast %38 : vector<1x1xf32> to vector<1x256xf32>
      %45 = arith.minimumf %6, %44 : vector<1x256xf32>
      %46 = vector.broadcast %39 : vector<1x1xf32> to vector<1x256xf32>
      %47 = arith.minimumf %7, %46 : vector<1x256xf32>
      %48 = arith.subf %45, %41 : vector<1x256xf32>
      %cst_9 = arith.constant 0.000000e+00 : f32
      %49 = vector.broadcast %cst_9 : f32 to vector<1x256xf32>
      %50 = arith.maximumf %48, %49 : vector<1x256xf32>
      %51 = arith.subf %47, %43 : vector<1x256xf32>
      %cst_10 = arith.constant 0.000000e+00 : f32
      %52 = vector.broadcast %cst_10 : f32 to vector<1x256xf32>
      %53 = arith.maximumf %51, %52 : vector<1x256xf32>
      %54 = arith.mulf %50, %53 : vector<1x256xf32>
      %55 = arith.subf %38, %36 : vector<1x1xf32>
      %56 = arith.subf %39, %37 : vector<1x1xf32>
      %57 = arith.mulf %55, %56 : vector<1x1xf32>
      %58 = vector.broadcast %57 : vector<1x1xf32> to vector<1x256xf32>
      %59 = arith.addf %12, %58 : vector<1x256xf32>
      %60 = arith.subf %59, %54 : vector<1x256xf32>
      %cst_11 = arith.constant 9.99999971E-10 : f32
      %61 = vector.broadcast %cst_11 : f32 to vector<1x256xf32>
      %62 = arith.addf %60, %61 : vector<1x256xf32>
      %63 = arith.divf %54, %62 : vector<1x256xf32>
      %cst_12 = arith.constant 4.500000e-01 : f32
      %64 = vector.broadcast %cst_12 : f32 to vector<1x256xf32>
      %65 = arith.cmpf ogt, %63, %64 : vector<1x256xf32>
      %66 = vector.broadcast %arg4 : i32 to vector<1x256xi32>
      %67 = arith.cmpi sgt, %13, %66 : vector<1x256xi32>
      %68 = arith.andi %65, %67 : vector<1x256xi1>
      %69 = arith.extui %68 : vector<1x256xi1> to vector<1x256xi32>
      %70 = arith.sitofp %69 : vector<1x256xi32> to vector<1x256xf32>
      %71 = vector.broadcast %35 : vector<1x1xf32> to vector<1x256xf32>
      %72 = arith.mulf %71, %70 : vector<1x256xf32>
      %cst_13 = arith.constant 1.000000e+00 : f32
      %73 = vector.broadcast %cst_13 : f32 to vector<1x256xf32>
      %74 = arith.subf %73, %72 : vector<1x256xf32>
      %75 = arith.mulf %arg5, %74 : vector<1x256xf32>
      scf.yield %75 : vector<1x256xf32>
    }
    %c0_2 = arith.constant 0 : index
    %c0_3 = arith.constant 0 : index
    %c0_4 = arith.constant 0 : index
    %21 = vector.load %arg3[%c0_2, %c0_3, %c0_4] : memref<1x1x256xf32, #tpu.memory_space<vmem>>, vector<1x1x256xf32>
    %22 = vector.shape_cast %21 : vector<1x1x256xf32> to vector<1x256xf32>
    %23 = vector.shape_cast %20 : vector<1x256xf32> to vector<1x1x256xf32>
    tpu.vector_store %arg3[%c0_2, %c0_3, %c0_4], %23 {strides = array<i32>} : memref<1x1x256xf32, #tpu.memory_space<vmem>>, vector<1x1x256xf32>,
    return
  }
  func.func @transform_0(%arg0: i32, %arg1: memref<2xi32, #tpu.memory_space<smem>>) -> (i32, i32, i32) {
    %c0_i32 = arith.constant 0 : i32
    %c0_i32_0 = arith.constant 0 : i32
    %c0_i32_1 = arith.constant 0 : i32
    return %arg0, %c0_i32, %c0_i32_0 : i32, i32, i32
  }
  func.func @transform_1(%arg0: i32, %arg1: memref<2xi32, #tpu.memory_space<smem>>) -> (i32, i32, i32) {
    %c0_i32 = arith.constant 0 : i32
    %c0_i32_0 = arith.constant 0 : i32
    %c0_i32_1 = arith.constant 0 : i32
    return %arg0, %c0_i32, %c0_i32_0 : i32, i32, i32
  }
}

</mosaic_0001>

<bundles_post_ra>
// kernel: _lambda_.2
= control target key start
LH: loop header
LB: loop body
LE: loop exit
PB: predicated region body
PF: predicated region fallthrough
CT: control target
= control target key end

     0   :  { %6 = vsyncpa [#allocation3], 0  ;;  %s720_s0 = inlined_call_operand.hbm [shape: f32[2,16,256], index: 0, kind: input, shape index: {}]   ;;  %s721_s1 = inlined_call_operand.vmem [shape: f32[2,6,256], index: 1, kind: output, shape index: {}]  }
   0x1   :  { %8 = vsyncpa [#allocation3 + $0x1], 0  ;;  %s546_s6 = smov 0   ;;  %s548_s7 = smov 0  }
   0x2   :  { %s550_s8 = smov 0   ;;  %s552_s9 = smov 0  }
   0x3 LB: > { %s565_s10 = sadd.s32 4294967295, %s530_s9   ;;  %s568_s11 = sadd.s32 1, %s530_s9   ;;  %s530_s9 = sphi %s552_s9, %s730_s9   ;;  %s526_s8 = sphi %s550_s8, %s729_s8   ;;  %s522_s7 = sphi %s548_s7, %s728_s7   ;;  %s518_s6 = sphi %s546_s6, %s727_s6  }
   0x4   : > { %s18_s12 = ssub.s32 %s530_s9, %s568_s11  ;;  %s21_s13 = sadd.s32 1, %s526_s8 }
   0x5   : > { %p19_p0 = scmp.eq.s32.totalorder %s18_s12, 0  ;;  %p28_p1 = scmp.ne.s32.totalorder %s526_s8, %s522_s7 }
   0x6   : > { %p29_p2 = scmp.eq.s32.totalorder %s530_s9, 0  ;;  %p34_p3 = scmp.ne.s32.totalorder %s522_s7, %s518_s6 }
   0x7   : > { %s578_s14 = scalar_select %p19_p0, %s526_s8, %s21_s13  }
   0x8   : > { %p30_p4 = por %p29_p2, %p28_p1  ;;  %p35_p5 = scmp.eq.s32.totalorder %s565_s10, 0 }
   0x9   : > { %p430_p6 = scmp.lt.s32.totalorder %s530_s9, 2  ;;  %s84_s16 = sand.u32 1, %s526_s8  }
   0xa   : > { %p582_p7 = por %p35_p5, %p34_p3  ;;  %s408_s17 = sshll.u32 %s84_s16, 5 }
   0xb   : > { %s422_s18 = sshll.u32 %s530_s9, 9  ;;  %s88_s22 = scalar_lea.vmem [#allocation2], %s408_s17 }
   0xc   : > { %s591_s21 = scalar_lea.hbm %s720_s0, %s422_s18  ;;  %s95_s23 = sshll.u32 %s88_s22, 4  ;;  %s593_s23 = int_to_ptr.vmem [resolvable:$true] %s95_s23 }
   0xd   : > { %p595_p8 = pnand %p430_p6, %p30_p4  ;;  %s600_s25 = scalar_lea.sflag [#allocation3], %s84_s16 }
   0xe   : > { %s466_s26 = scalar_lea.hbm %s591_s21, 512  ;;  %s471_s29 = scalar_lea.hbm %s720_s0, 1024 }
   0xf   : > { %p467_p10 = scmp.ne.s32.totalorder %s591_s21, %s466_s26  ;;  %p468_p11 = pneg %p595_p8 }
  0x10   : > { %p472_p0 = scmp.lt.u32.totalorder %s591_s21, %s720_s0  ;;  %p473_p1 = scmp.lt.u32.totalorder %s471_s29, %s466_s26 }
  0x11   : > { %p469_p12 = pnand %p468_p11, %p467_p10  ;;  %p475_p3 = scmp.lt.u32.totalorder %s466_s26, %s591_s21 }
  0x12   : > { %p474_p2 = por %p473_p1, %p472_p0 }
  0x13   : > { %p470_p13 = pneg %p469_p12 }
  0x14   : > { %p476_p4 = por %p475_p3, %p474_p2 }
  0x16   : > { %p477_p5 = pnand %p476_p4, %p470_p13 }
  0x18   : > { %480 = shalt.err (!%p477_p5)
}
  0x19   : > { %s481_s3 = scalar_lea.vmem %s593_s23, 512  ;;  %s532_s4 = smov [#allocation2]  }
  0x1a   : > { %p482_p6 = scmp.ne.s32.totalorder %s593_s23, %s481_s3  ;;  %s486_s5 = sshll.u32 %s532_s4, 4  ;;  %s487_s5 = int_to_ptr.vmem [resolvable:$false] %s486_s5 }
  0x1b   : > { %s488_s6 = scalar_lea.vmem %s487_s5, 1024  ;;  %p489_p9 = scmp.lt.s32.totalorder %s593_s23, %s487_s5 }
  0x1c   : > { %p484_p10 = pnand %p482_p6, %p468_p11  ;;  %p490_p0 = scmp.lt.s32.totalorder %s488_s6, %s481_s3 }
  0x1e   : > { %p485_p12 = pneg %p484_p10  ;;  %p491_p1 = por %p490_p0, %p489_p9 }
  0x20   : > { %p492_p2 = pnand %p491_p1, %p485_p12 }
  0x22   : > { %495 = shalt.err (!%p492_p2)
}
  0x23   : > { %s533_s12 = smov 256   ;;  %s534_s13 = smov 16  }
  0x24   : > { %429 = dma.hbm_to_vmem [thread:$0]  (!%p595_p8), %s591_s21, 512, %s593_s23, %s600_s25, %s533_s12, %s533_s12, %s534_s13  }
  0x25   : > { %p103_p11 = scmp.lt.s32.totalorder %s530_s9, 3  ;;  %p724_p13 = scmp.ge.s32.totalorder %s530_s9, 1 }
  0x27   : > { %p104_p3 = pnand %p724_p13, %p103_p11 }
  0x28   : > { %s109_s16 = sand.u32 (!%p104_p3), 1, %s522_s7  }
  0x29   : > { %107 = sbr.rel (%p104_p3) target bundleno = 99 (0x63), region = 24  ;;  %s412_s17 = sshll.u32 (!%p104_p3), %s109_s16, 5 }
  0x2a   : > { %s110_s18 = scalar_lea.sflag (!%p104_p3), [#allocation3], %s109_s16  ;;  %s113_s19 = scalar_lea.vmem (!%p104_p3), [#allocation2], %s412_s17 }
  0x30   : > { %513 = dma.done.wait (%p582_p7), %s110_s18, 512  }
  0x31   : > { %515 = vsyncadd (%p582_p7), %s110_s18, 4294966784  ;;  %v141_v0 = vlaneseq  ;;  %v535_v3 = vmov 1966171168   ;;  %p132_p8 = scmp.lt.s32.totalorder %s565_s10, 1  ;;  %v637_v5 = vld [vmem:[%s113_s19] sm:$0xff]  ;;  %v639_v6 = vld [vmem:[%s113_s19 + $0x8] sm:$0xff] }
  0x32   : > { %v231_v4 = vunpack.c.l.s4 %v535_v3  ;;  %v139_v7 = vld [vmem:[%s113_s19 + $0x10] sm:$0xff]  ;;  %v140_v8 = vld [vmem:[%s113_s19 + $0x18] sm:$0xff]  ;;  %v207_v11 = vmul.f32 0.5, %v637_v5  ;;  %vm153_vm0 = vcmask 1047557   ;;  %v208_v13 = vmul.f32 0.5, %v639_v6 }
  0x33   : > { %v142_v1 = vshrl.u32 %v141_v0, 7  ;;  %s732_s10 = smov (!%p132_p8, %s565_s10), 1  ;;  %vm665_vm1 = vcmp.lt.s32.totalorder %v141_v0, 256  ;;  %vm181_vm2 = vcmask 1044480   ;;  %vm219_vm3 = vcmp.gt.f32.partialorder %v637_v5, 0.25 }
  0x34   : > { %v232_v12 = vunpack.c.0.s8 %v231_v4  ;;  %v211_v18 = vrot.slane %v207_v11, 2  ;;  %v212_v19 = vrot.slane %v208_v13, 2  ;;  %s423_s9 = sshll.u32 %s732_s10, 4  ;;  %vm220_vm4 = vcmp.gt.f32.partialorder %v639_v6, 0.25 }
  0x35   : > { %v143_v2 = vsub.s32 4, %v142_v1  ;;  %v172_v27 = vadd.s32 8, %v142_v1  ;;  %s673_s21 = scalar_lea.vmem %s721_s1, %s423_s9  ;;  %v173_v37 = vcvt.s32.f32 %v142_v1 }
  0x36   : > { %v656_v22 = vsub.s32 %v232_v12, %v142_v1  ;;  %v215_v23 = vsub.f32 %v637_v5, %v211_v18  ;;  %v216_v24 = vsub.f32 %v639_v6, %v212_v19  ;;  %v217_v25 = vadd.f32 %v211_v18, %v637_v5 }
  0x37   : > { %v144_v9 = vrot.slane %v637_v5, %v143_v2  ;;  %v148_v10 = vrot.slane %v639_v6, %v143_v2  ;;  %v218_v26 = vadd.f32 %v212_v19, %v639_v6  ;;  %v174_v38 = vcvt.s32.f32 %v172_v27 }
  0x38   : > { %v229_v30 = vcombine.low %v215_v23, %v216_v24  ;;  %v182_v51 = vrot.slane %v173_v37, 3 }
  0x39   : > { %v149_v14 = vmul.f32 %v144_v9, %v637_v5  ;;  %v150_v15 = vmul.f32 %v148_v10, %v639_v6  ;;  %v647_v16 = vmul.f32 %v144_v9, %v139_v7  ;;  %v649_v17 = vmul.f32 %v148_v10, %v140_v8 }
  0x3a   : > { %v265_v31 = vcombine.low %v217_v25, %v218_v26  ;;  %v236_v34 = vrot.slane %v229_v30, %v656_v22  ;;  %v183_v52 = vrot.slane %v174_v38, 3 }
  0x3b   : > { %v154_v20 = vsel %vm153_vm0, %v149_v14, -inf  ;;  %v162_v21 = vsel %vm153_vm0, %v150_v15, -inf }
  0x3c   : > { %v155_v28 = vmax.f32 %v154_v20, %v647_v16  ;;  %v163_v29 = vmax.f32 %v162_v21, %v649_v17  ;;  %v272_v36 = vrot.slane %v265_v31, %v656_v22  ;;  %v243_v41 = vrot.slane %v236_v34, %v656_v22 }
  0x3d   : > { %v251_v42 = vcombine.high %v236_v34, %v236_v34  ;;  %v184_v57 = vsel %vm181_vm2, %v182_v51, %v183_v52 }
  0x3e   : > { %v156_v32 = vrot.slane %v155_v28, 4  ;;  %v164_v33 = vrot.slane %v163_v29, 4  ;;  %v279_v43 = vrot.slane %v272_v36, %v656_v22  ;;  %v284_v44 = vcombine.high %v272_v36, %v272_v36  ;;  %249 = vst.msk [vmem:[%s673_s21] ss:$8 sm:$0x3] %vm665_vm1, %v243_v41 }
  0x3f   : > { %v258_v47 = vrot.slane %v251_v42, %v656_v22 }
  0x40   : > { %v157_v39 = vmax.f32 %v155_v28, %v156_v32  ;;  %v165_v40 = vmax.f32 %v163_v29, %v164_v33  ;;  %416 = vst.msk [vmem:[%s673_s21 + $0x2] ss:$8 sm:$0x3] %vm665_vm1, %v279_v43  ;;  %v291_v48 = vrot.slane %v284_v44, %v656_v22 }
  0x41   : > { %415 = vst.msk [vmem:[%s673_s21 + $0x1] ss:$8 sm:$0x3] %vm665_vm1, %v258_v47 }
  0x42   : > { %v158_v45 = vrot.slane %v157_v39, 2  ;;  %v166_v46 = vrot.slane %v165_v40, 2  ;;  %417 = vst.msk [vmem:[%s673_s21 + $0x3] ss:$8 sm:$0x3] %vm665_vm1, %v291_v48 }
  0x44   : > { %v159_v49 = vmax.f32 %v157_v39, %v158_v45  ;;  %v167_v50 = vmax.f32 %v165_v40, %v166_v46 }
  0x46   : > { %v160_v53 = vrot.slane %v159_v49, 1  ;;  %v168_v54 = vrot.slane %v167_v50, 1 }
  0x48   : > { %v161_v55 = vmax.f32 %v159_v49, %v160_v53  ;;  %v169_v56 = vmax.f32 %v167_v50, %v168_v54 }
  0x4a   : > { %vm221_vm5 = vcmp.gt.f32.partialorder %v161_v55, 0.25  ;;  %vm222_vm6 = vcmp.gt.f32.partialorder %v169_v56, 0.25  ;;  %vm175_vm7 = vcmp.ge.f32.partialorder %v149_v14, %v161_v55  ;;  %vm176_vm8 = vcmp.ge.f32.partialorder %v150_v15, %v169_v56 }
  0x4b   : > { %vm223_vm9 = vmand %vm219_vm3, %vm221_vm5  ;;  %vm177_vm10 = vcmp.ge.f32.partialorder %v647_v16, %v161_v55  ;;  %vm178_vm11 = vcmp.ge.f32.partialorder %v649_v17, %v169_v56  ;;  %v187_v58 = vsel %vm175_vm7, %v182_v51, 11.0  ;;  %v188_v59 = vsel %vm176_vm8, %v182_v51, 11.0 }
  0x4c   : > { %vm224_vm12 = vmand %vm220_vm4, %vm222_vm6  ;;  %v225_v60 = vsel %vm223_vm9, %v161_v55, 0.0  ;;  %v189_v61 = vsel %vm177_vm10, %v184_v57, 11.0  ;;  %v190_v62 = vsel %vm178_vm11, %v184_v57, 11.0  ;;  %v191_v63 = vsel %vm153_vm0, %v187_v58, inf }
  0x4d   : > { %v226_v0 = vsel %vm224_vm12, %v169_v56, 0.0  ;;  %v192_v1 = vmin.f32 %v191_v63, %v189_v61  ;;  %v199_v2 = vsel %vm153_vm0, %v188_v59, inf }
  0x4e   : > { %v298_v3 = vcombine.high %v225_v60, %v226_v0  ;;  %v200_v4 = vmin.f32 %v199_v2, %v190_v62 }
  0x4f   : > { %v193_v5 = vrot.slane %v192_v1, 4 }
  0x50   : > { %v305_v6 = vrot.slane %v298_v3, %v656_v22  ;;  %v201_v7 = vrot.slane %v200_v4, 4 }
  0x51   : > { %v194_v8 = vmin.f32 %v192_v1, %v193_v5 }
  0x52   : > { %v312_v9 = vrot.slane %v305_v6, %v656_v22  ;;  %v202_v10 = vmin.f32 %v200_v4, %v201_v7 }
  0x53   : > { %v195_v11 = vrot.slane %v194_v8, 2 }
  0x54   : > { %418 = vst.msk [vmem:[%s673_s21 + $0x4] ss:$8 sm:$0x3] %vm665_vm1, %v312_v9  ;;  %v203_v12 = vrot.slane %v202_v10, 2 }
  0x55   : > { %v196_v13 = vmin.f32 %v194_v8, %v195_v11 }
  0x56   : > { %v204_v14 = vmin.f32 %v202_v10, %v203_v12 }
  0x57   : > { %v197_v15 = vrot.slane %v196_v13, 1 }
  0x58   : > { %v205_v16 = vrot.slane %v204_v14, 1 }
  0x59   : > { %v198_v17 = vmin.f32 %v196_v13, %v197_v15 }
  0x5a   : > { %v206_v18 = vmin.f32 %v204_v14, %v205_v16 }
  0x5c   : > { %v319_v19 = vcombine.low %v198_v17, %v206_v18 }
  0x5e   : > { %v326_v20 = vrot.slane %v319_v19, %v656_v22 }
  0x60   : > { %v333_v21 = vrot.slane %v326_v20, %v656_v22 }
  0x62   : > { %419 = vst.msk [vmem:[%s673_s21 + $0x5] ss:$8 sm:$0x3] %vm665_vm1, %v333_v21 }
  0x63 PF: > { %p11_p7 = scmp.ge.s32.totalorder %s568_s11, 4   ;;  %s727_s6 = smov %s522_s7 }
  0x64   : > { %s728_s7 = smov %s526_s8  ;;  %s729_s8 = smov %s578_s14 }
  0x65   : > { %s730_s9 = smov %s568_s11  ;;  %13 = sbr.rel (!%p11_p7) target bundleno = 3 (0x3), region = 69 }
  0x6c   :  { %359 = vsyncpa [#allocation3], 1 }
  0x6d   :  { %361 = vsyncpa [#allocation3 + $0x1], 1 }

// kernel: _lambda_.3
= control target key start
LH: loop header
LB: loop body
LE: loop exit
PB: predicated region body
PF: predicated region fallthrough
CT: control target
= control target key end

     0   :  { %s589_s0 = inlined_call_operand.vmem [shape: s32[2], index: 0, kind: input, shape index: {}]   ;;  %s590_s1 = inlined_call_operand.vmem [shape: f32[2,5,256], index: 1, kind: input, shape index: {}]   ;;  %s591_s2 = inlined_call_operand.vmem [shape: f32[2,1,256], index: 2, kind: output, shape index: {}]  }
   0x1   :  { %s7_s11 = sshll.u32 %s589_s0, 4  ;;  %s8_s11 = int_to_ptr.vmem [resolvable:$true] %s7_s11 }
   0x2   :  { %s409_s12 = scalar_lea.vmem %s8_s11, 16  ;;  %p414_p1 = scmp.lt.s32.totalorder %s8_s11, %s8_s11 }
   0x3   :  { %p410_p0 = scmp.ne.s32.totalorder %s8_s11, %s409_s12  ;;  %p415_p2 = scmp.lt.s32.totalorder %s409_s12, %s409_s12 }
   0x5   :  { %p416_p3 = por %p415_p2, %p414_p1 }
   0x7   :  { %p417_p4 = pnand %p416_p3, %p410_p0 }
   0x9   :  { %420 = shalt.err (!%p417_p4)  }
   0xa   :  { %s471_s13 = smov [#allocation3]  }
   0xb   :  { %10 = dma.vmem_to_smem %s8_s11, 16, %s471_s13, [#allocation2] }
   0xc   :  { %445 = dma.done.wait [#allocation2], 16 }
   0xd   :  { %446 = vsyncadd [#allocation2], 4294967280 }
   0xe   :  { %12 = sfence }
   0xf   :  { %s494_s14 = smov 0  }
  0x10 LB: > { %s335_s0 = sadd.s32 4294967295, %s449_s14   ;;  %p339_p5 = scmp.ge.s32.totalorder %s449_s14, 1  ;;  %s449_s14 = sphi %s494_s14, %s18_s14  }
  0x11   : > { %p94_p6 = scmp.lt.s32.totalorder %s449_s14, 3 }
  0x13   : > { %p95_p7 = pnand %p339_p5, %p94_p6 }
  0x14   : > { %p113_p8 = scmp.lt.s32.totalorder (!%p95_p7), %s335_s0, 1  ;;  %s502_s15 = sld [smem:[#allocation3 + %s335_s0]] (!%p95_p7)  ;;  %v141_v0 = vlaneseq (!%p95_p7)  ;;  %v472_v7 = vmov (!%p95_p7), 0.0  }
  0x15   : > { %98 = sbr.rel (%p95_p7) target bundleno = 367 (0x16f), region = 24 }
  0x16   : > { %v505_v1 = vand.u32 (!%p95_p7), 127, %v141_v0 }
  0x18   : > { %v508_v2 = vadd.s32 (!%p95_p7), 128, %v505_v1 }
  0x1a   : > { %p345_p9 = scmp.le.s32.totalorder (!%p95_p7), %s502_s15, 0 }
  0x1c   : > { %s598_s0 = smov (!%p113_p8, %s335_s0), 1  ;;  %s541_s24 = smov (!%p345_p9), 0  }
  0x1d   : > { %s350_s16 = sshll.u32 %s598_s0, 4  ;;  %s342_s17 = sshll.u32 %s598_s0, 1 }
  0x1e   : > { %s117_s20 = scalar_lea.vmem %s590_s1, %s350_s16  ;;  %s516_s23 = scalar_lea.vmem %s591_s2, %s342_s17 }
  0x1f   : > { %v518_v3 = vld [vmem:[%s117_s20] sm:$0x1f]  ;;  %v520_v4 = vld [vmem:[%s117_s20 + $0x8] sm:$0x1f] }
  0x20   : > { %v127_v5 = vrot.slane %v518_v3, 6  ;;  %v128_v6 = vrot.slane %v520_v4, 6  ;;  %vm144_vm0 = vcmp.gt.f32.partialorder %v518_v3, 0.0  ;;  %vm145_vm1 = vcmp.gt.f32.partialorder %v520_v4, 0.0  ;;  %308 = sbr.rel (%p345_p9) target bundleno = 355 (0x163), region = 55 }
  0x21   : > { %v343_v8 = vsel %vm144_vm0, 1.0, %v472_v7   ;;  %v344_v9 = vsel %vm145_vm1, 1.0, %v472_v7  }
  0x22   : > { %v131_v10 = vsub.f32 %v518_v3, %v127_v5  ;;  %v132_v11 = vsub.f32 %v520_v4, %v128_v6  ;;  %v592_v16 = vmov %v344_v9  ;;  %v593_v17 = vmov %v343_v8 }
  0x24   : > { %v135_v12 = vrot.slane %v131_v10, 1  ;;  %v136_v13 = vrot.slane %v132_v11, 1 }
  0x26   : > { %v528_v14 = vmul.f32 %v135_v12, %v131_v10  ;;  %v530_v15 = vmul.f32 %v136_v13, %v132_v11 }
  0x27 LB: >> { %v158_v18 = vstv %s461_s24  ;;  %vm167_vm2 = vcmask 1043456   ;;  %v473_v24 = vmov 0   ;;  %vm175_vm5 = vcmask 1044484   ;;  %s153_s24 = sadd.s32 1, %s461_s24   ;;  %s461_s24 = sphi %s541_s24, %s153_s24   ;;  %v457_v8 = vphi %v343_v8, %v595_v8   ;;  %v453_v9 = vphi %v344_v9, %v594_v9  }
  0x28   : >> { %vm159_vm3 = vcmp.eq.s32.totalorder %v505_v1, %v158_v18  ;;  %vm160_vm4 = vcmp.eq.s32.totalorder %v508_v2, %v158_v18  ;;  %404 = vset.pattern.permute.xlu0 %v473_v24  ;;  %vm228_vm6 = vcmp.gt.s32.totalorder %v505_v1, %v158_v18  ;;  %vm229_vm7 = vcmp.gt.s32.totalorder %v508_v2, %v158_v18  ;;  %p152_p10 = scmp.ge.s32.totalorder %s153_s24, %s502_s15 }
  0x29   : >> { %v165_v19 = vsel %vm159_vm3, %v518_v3, 0.0  ;;  %v166_v20 = vsel %vm160_vm4, %v520_v4, 0.0  ;;  %v173_v25 = vsel %vm159_vm3, %v457_v8, 0.0  ;;  %v174_v26 = vsel %vm160_vm4, %v453_v9, 0.0 }
  0x2a   : >> { %v168_v21 = vsel %vm167_vm2, %v165_v19, 0.0  ;;  %v169_v22 = vsel %vm167_vm2, %v166_v20, 0.0  ;;  %v176_v27 = vsel %vm175_vm5, %v173_v25, 0.0  ;;  %v177_v28 = vsel %vm175_vm5, %v174_v26, 0.0 }
  0x2b   : >> { %v170_v23 = vadd.f32 %v169_v22, %v168_v21  ;;  %v178_v29 = vadd.f32 %v177_v28, %v176_v27  ;;  %v474_v60 = vmov 0.0  }
  0x2d   : >> { %171 = vadd.xlane.f32.xlu0 %v170_v23  ;;  %179 = vadd.xlane.f32.xlu1 %v178_v29 }
  0xba   : >> { %v172_v30 = vpop.xlane.xlu0 %171  ;;  %v180_v62 = vpop.xlane.xlu1 %179 }
  0xbb   : >> { %v204_v31 = vrot.slane %v172_v30, 6  ;;  %v181_v35 = vmax.f32 %v518_v3, %v172_v30  ;;  %v182_v36 = vmax.f32 %v520_v4, %v172_v30  ;;  %v183_v39 = vmin.f32 %v518_v3, %v172_v30 }
  0xbc   : >> { %v184_v40 = vmin.f32 %v520_v4, %v172_v30 }
  0xbd   : >> { %v206_v32 = vsub.f32 %v172_v30, %v204_v31  ;;  %v187_v37 = vrot.slane %v181_v35, 6  ;;  %v188_v38 = vrot.slane %v182_v36, 6 }
  0xbf   : >> { %v208_v33 = vrot.slane %v206_v32, 1  ;;  %v191_v41 = vsub.f32 %v183_v39, %v187_v37  ;;  %v192_v42 = vsub.f32 %v184_v40, %v188_v38 }
  0xc1   : >> { %v210_v34 = vmul.f32 %v208_v33, %v206_v32  ;;  %v193_v43 = vmax.f32 %v191_v41, 0.0  ;;  %v194_v44 = vmax.f32 %v192_v42, 0.0 }
  0xc3   : >> { %213 = vperm.xlu0 %404, %v210_v34   ;;  %v197_v45 = vrot.slane %v193_v43, 1  ;;  %v198_v46 = vrot.slane %v194_v44, 1 }
  0xc5   : >> { %v201_v48 = vmul.f32 %v197_v45, %v193_v43  ;;  %v202_v49 = vmul.f32 %v198_v46, %v194_v44 }
 0x142   : >> { %v214_v47 = vpop.permute.xlu0 %213 }
 0x143   : >> { %v216_v50 = vadd.f32 %v214_v47, %v528_v14  ;;  %v217_v51 = vadd.f32 %v214_v47, %v530_v15 }
 0x145   : >> { %v218_v52 = vsub.f32 %v216_v50, %v201_v48  ;;  %v219_v53 = vsub.f32 %v217_v51, %v202_v49 }
 0x147   : >> { %v220_v54 = vadd.f32 1e-09, %v218_v52  ;;  %v221_v55 = vadd.f32 1e-09, %v219_v53 }
 0x149   : >> { %405 = vrcp.f32 %v220_v54 }
 0x14a   : >> { %407 = vrcp.f32 %v221_v55 }
 0x153   : >> { %v406_v56 = vpop.eup %405 }
 0x154   : >> { %v408_v57 = vpop.eup %407  ;;  %v223_v58 = vmul.f32 %v406_v56, %v201_v48 }
 0x155   : >> { %v225_v59 = vmul.f32 %v408_v57, %v202_v49 }
 0x156   : >> { %vm226_vm8 = vcmp.gt.f32.partialorder %v223_v58, 0.45 }
 0x157   : >> { %vm227_vm9 = vcmp.gt.f32.partialorder %v225_v59, 0.45  ;;  %vm230_vm10 = vmand %vm226_vm8, %vm228_vm6 }
 0x158   : >> { %vm231_vm11 = vmand %vm227_vm9, %vm229_vm7  ;;  %v346_v61 = vsel %vm230_vm10, 1.0, %v474_v60 }
 0x159   : >> { %v347_v63 = vsel %vm231_vm11, 1.0, %v474_v60  ;;  %v238_v5 = vrot.slane %v346_v61, 6 }
 0x15a   : >> { %v239_v6 = vrot.slane %v347_v63, 6 }
 0x15b   : >> { %v242_v7 = vmul.f32 %v238_v5, %v180_v62 }
 0x15c   : >> { %v243_v10 = vmul.f32 %v239_v6, %v180_v62  ;;  %155 = sbr.rel (!%p152_p10) target bundleno = 39 (0x27), region = 61 }
 0x15d   : >> { %v244_v11 = vsub.f32 1.0, %v242_v7 }
 0x15e   : >> { %v245_v12 = vsub.f32 1.0, %v243_v10 }
 0x15f   : >> { %v246_v13 = vmul.f32 %v457_v8, %v244_v11  }
 0x160   : >> { %v247_v16 = vmul.f32 %v453_v9, %v245_v12  }
 0x161   : >> { %v595_v8 = vmov %v246_v13  ;;  %v596_v17 = vmov (%p152_p10), %v246_v13 }
 0x162   : >> { %v594_v9 = vmov %v247_v16 }
 0x163 PF: > { %v475_v8 = vmov 1966171168   ;;  %v255_v19 = vshrl.u32 %v141_v0, 7  ;;  %v250_v20 = vcombine.high %v469_v17, %v465_v16  ;;  %vm268_vm12 = vcmp.lt.s32.totalorder %v141_v0, 256  ;;  %v469_v17 = vphi %v593_v17, %v596_v17   ;;  %v465_v16 = vphi %v592_v16, %v247_v16  }
 0x164   : > { %v252_v18 = vunpack.c.l.s4 %v475_v8 }
 0x166   : > { %v253_v21 = vunpack.c.0.s8 %v252_v18 }
 0x168   : > { %v256_v22 = vsub.s32 %v253_v21, %v255_v19 }
 0x16a   : > { %v257_v23 = vrot.slane %v250_v20, %v256_v22 }
 0x16c   : > { %v264_v1 = vrot.slane %v257_v23, %v256_v22 }
 0x16e   : > { %270 = vst.msk [vmem:[%s516_s23] sm:$0x3] %vm268_vm12, %v264_v1 }
 0x16f PF: > { %s18_s14 = sadd.s32 1, %s449_s14  }
 0x170   : > { %p15_p11 = scmp.ge.s32.totalorder %s18_s14, 4  }
 0x172   :  { %17 = sbr.rel (!%p15_p11) target bundleno = 16 (0x10), region = 72 }

</bundles_post_ra>
